<compile_context>
chip_gen: v6e
topology: v6e:2x2x1
jax: 0.10.0
libtpu: 0.0.40
codegen_flags: <defaults>
</compile_context>

<pallas_src>
import math
import functools

import numpy as np
import jax
import jax.numpy as jnp
from jax.experimental import pallas as pl
from jax.experimental.pallas import tpu as pltpu


def encoder_layer_kernel(xq_ref, xf_ref, wq_ref, wk_ref, wv_ref,
                         bq_ref, bk_ref, bv_ref,
                         w1_ref, b1_ref, w2_ref, b2_ref,
                         g1_ref, be1_ref, g2_ref, be2_ref,
                         o_ref, *, num_heads, head_dim, eps, compute_dtype):
    f32 = jnp.float32
    cdt = compute_dtype

    xq = xq_ref[...]                      # (tS, D) query / residual rows, f32
    xf = xf_ref[...]                      # (S, D)  full sequence rows (K/V source), f32

    # ---- c_attn projections: low-precision inputs, f32 accumulation on MXU ----
    q = jnp.dot(xq.astype(cdt), wq_ref[...], preferred_element_type=f32) + bq_ref[...]
    k = jnp.dot(xf.astype(cdt), wk_ref[...], preferred_element_type=f32) + bk_ref[...]
    v = jnp.dot(xf.astype(cdt), wv_ref[...], preferred_element_type=f32) + bv_ref[...]

    # Fold the softmax scale into the small (tS, D) query tensor.
    q = q * (1.0 / math.sqrt(head_dim))

    # ---- head-batched SDPA: heads become the batch dim of two batched matmuls ----
    def split_heads(t):                   # (rows, D) -> (H, rows, head_dim)
        return jnp.stack(
            [t[:, h * head_dim:(h + 1) * head_dim] for h in range(num_heads)],
            axis=0)

    qh = split_heads(q).astype(cdt)       # (H, tS, hd)
    kh = split_heads(k).astype(cdt)       # (H, S,  hd)
    vh = split_heads(v).astype(cdt)       # (H, S,  hd)

    # Contraction on the trailing dim of BOTH operands -> no materialized k.T.
    s = jnp.einsum("hqd,hkd->hqk", qh, kh, preferred_element_type=f32)
    m = jnp.max(s, axis=-1, keepdims=True)            # f32 softmax statistics
    p = jnp.exp(s - m)
    denom = jnp.sum(p, axis=-1, keepdims=True)

    ctx = jnp.einsum("hqk,hkd->hqd", p.astype(cdt), vh, preferred_element_type=f32)
    # Normalize the small (H, tS, hd) context, not the (H, tS, S) probs;
    # approx reciprocal runs on the EUP slot.
    ctx = ctx * pl.reciprocal(denom, approx=True)
    attn = jnp.concatenate([ctx[h] for h in range(num_heads)], axis=-1)   # (tS, D)
    # dropout1 is identity in eval mode; the reference forward never applies c_proj.

    # ---- residual + LayerNorm1 (biased variance, matches torch.nn.LayerNorm) ----
    x1 = xq + attn
    mu1 = jnp.mean(x1, axis=-1, keepdims=True)
    xc1 = x1 - mu1
    var1 = jnp.mean(xc1 * xc1, axis=-1, keepdims=True)
    x1n = xc1 * jax.lax.rsqrt(var1 + eps) * g1_ref[...] + be1_ref[...]

    # ---- feed-forward: linear1 -> relu -> linear2 (dropouts identity) ----
    h1 = jnp.dot(x1n.astype(cdt), w1_ref[...], preferred_element_type=f32) + b1_ref[...]
    h1 = jnp.maximum(h1, 0.0)
    ff = jnp.dot(h1.astype(cdt), w2_ref[...], preferred_element_type=f32) + b2_ref[...]

    # ---- residual + LayerNorm2 ----
    x2 = x1n + ff
    mu2 = jnp.mean(x2, axis=-1, keepdims=True)
    xc2 = x2 - mu2
    var2 = jnp.mean(xc2 * xc2, axis=-1, keepdims=True)
    o_ref[...] = (xc2 * jax.lax.rsqrt(var2 + eps) * g2_ref[...] + be2_ref[...]
                  ).astype(o_ref.dtype)


def _pick_vmem_limit_bytes():
    # Above the ~32 MiB scoped default (lets big resident weight tiles compile)
    # but with headroom below physical VMEM (64 MiB/TC on v7x, 128 MiB on v5e/v6e).
    default = 48 * 1024 * 1024
    try:
        cap = int(pltpu.get_tpu_info().vmem_capacity_bytes)
        return int(min(max(cap - 16 * 1024 * 1024, default), 112 * 1024 * 1024))
    except Exception:
        return default


def transformer_encoder_layer(x, params, *, num_heads, eps=1e-5,
                              block_s=256, compute_dtype=jnp.bfloat16):
    B, S, D = x.shape
    assert D % num_heads == 0
    head_dim = D // num_heads
    F = params["w1"].shape[1]

    # Sequence tiling (pipeline depth, bounded per-step working set).
    tS = S if S <= block_s else block_s
    if S % tS != 0 or tS % 8 != 0:
        tS = S                       # fallback: whole sequence per grid step
    T = S // tS

    # Split the fused c_attn parameters outside the kernel (free, XLA side) and
    # ship the matmul weights in bf16 (halves DMA bytes / VMEM footprint).
    wq = params["wqkv"][:, :D].astype(compute_dtype)
    wk = params["wqkv"][:, D:2 * D].astype(compute_dtype)
    wv = params["wqkv"][:, 2 * D:].astype(compute_dtype)
    bq = params["bqkv"][:, :D]
    bk = params["bqkv"][:, D:2 * D]
    bv = params["bqkv"][:, 2 * D:]
    w1 = params["w1"].astype(compute_dtype)
    w2 = params["w2"].astype(compute_dtype)

    kernel = functools.partial(encoder_layer_kernel, num_heads=num_heads,
                               head_dim=head_dim, eps=eps,
                               compute_dtype=compute_dtype)

    def const(shape):
        return pl.BlockSpec(shape, lambda b, t, _s=shape: (0,) * len(_s))

    grid_spec = pltpu.PrefetchScalarGridSpec(
        num_scalar_prefetch=0,
        grid=(B, T),
        in_specs=[
            pl.BlockSpec((None, tS, D), lambda b, t: (b, t, 0)),   # x (query rows)
            pl.BlockSpec((None, S, D), lambda b, t: (b, 0, 0)),    # x (full, K/V src)
            const((D, D)), const((D, D)), const((D, D)),           # wq, wk, wv
            const((1, D)), const((1, D)), const((1, D)),           # bq, bk, bv
            const((D, F)), const((1, F)),                          # w1, b1
            const((F, D)), const((1, D)),                          # w2, b2
            const((1, D)), const((1, D)),                          # gamma1, beta1
            const((1, D)), const((1, D)),                          # gamma2, beta2
        ],
        out_specs=pl.BlockSpec((None, tS, D), lambda b, t: (b, t, 0)),
    )

    # Advisory cost estimate for XLA's scheduler.
    flops = int(2 * B * S * D * D * (1 + 2 * T)        # q + (k, v recomputed per tile)
                + 4 * B * S * S * D                     # scores + p@v
                + 4 * B * S * D * F)                    # FFN
    transcendentals = int(B * num_heads * S * (S + 1) + 2 * B * S)
    param_bytes = sum(int(np.prod(a.shape)) * a.dtype.itemsize
                      for a in (wq, wk, wv, bq, bk, bv, w1, params["b1"],
                                w2, params["b2"], params["g1"], params["be1"],
                                params["g2"], params["be2"]))
    bytes_accessed = int(2 * x.size * x.dtype.itemsize + param_bytes)

    return pl.pallas_call(
        kernel,
        out_shape=jax.ShapeDtypeStruct((B, S, D), x.dtype),
        grid_spec=grid_spec,
        compiler_params=pltpu.CompilerParams(
            dimension_semantics=("parallel", "parallel"),
            vmem_limit_bytes=_pick_vmem_limit_bytes()),
        cost_estimate=pl.CostEstimate(flops=flops,
                                      transcendentals=transcendentals,
                                      bytes_accessed=bytes_accessed),
    )(x, x, wq, wk, wv, bq, bk, bv, w1, params["b1"], w2, params["b2"],
      params["g1"], params["be1"], params["g2"], params["be2"])


def reference_jax(x, params, *, num_heads, eps=1e-5):
    """Pure-JAX (f32) mirror of the PyTorch forward (eval mode) for verification."""
    B, S, D = x.shape
    hd = D // num_heads
    qkv = x @ params["wqkv"] + params["bqkv"][0]
    q, k, v = jnp.split(qkv, 3, axis=-1)
    reshape_heads = lambda t: t.reshape(B, S, num_heads, hd).transpose(0, 2, 1, 3)
    q, k, v = map(reshape_heads, (q, k, v))
    s = jnp.einsum("bhqd,bhkd->bhqk", q, k) / math.sqrt(hd)
    p = jax.nn.softmax(s, axis=-1)
    y = jnp.einsum("bhqk,bhkd->bhqd", p, v).transpose(0, 2, 1, 3).reshape(B, S, D)

    def ln(t, g, b):
        mu = t.mean(-1, keepdims=True)
        var = ((t - mu) ** 2).mean(-1, keepdims=True)
        return (t - mu) / jnp.sqrt(var + eps) * g[0] + b[0]

    x1 = ln(x + y, params["g1"], params["be1"])
    ff = jnp.maximum(x1 @ params["w1"] + params["b1"][0], 0.0) @ params["w2"] + params["b2"][0]
    return ln(x1 + ff, params["g2"], params["be2"])


if __name__ == "__main__":
    B, S, D, H, F = 2, 8, 32, 4, 64       # batch, seq, d_model, nhead, dim_feedforward
    key = jax.random.PRNGKey(0)
    ks = jax.random.split(key, 12)

    params = {
        "wqkv": 0.05 * jax.random.normal(ks[0], (D, 3 * D), jnp.float32),
        "bqkv": 0.05 * jax.random.normal(ks[1], (1, 3 * D), jnp.float32),
        "w1":   0.05 * jax.random.normal(ks[2], (D, F), jnp.float32),
        "b1":   0.05 * jax.random.normal(ks[3], (1, F), jnp.float32),
        "w2":   0.05 * jax.random.normal(ks[4], (F, D), jnp.float32),
        "b2":   0.05 * jax.random.normal(ks[5], (1, D), jnp.float32),
        "g1":   1.0 + 0.1 * jax.random.normal(ks[6], (1, D), jnp.float32),
        "be1":  0.1 * jax.random.normal(ks[7], (1, D), jnp.float32),
        "g2":   1.0 + 0.1 * jax.random.normal(ks[8], (1, D), jnp.float32),
        "be2":  0.1 * jax.random.normal(ks[9], (1, D), jnp.float32),
    }
    x = jax.random.normal(ks[10], (B, S, D), jnp.float32)

    out = transformer_encoder_layer(x, params, num_heads=H)
    out = jax.block_until_ready(out)

    ref = reference_jax(x, params, num_heads=H)
    # bf16 matmul inputs + approx softmax reciprocal -> bf16-level tolerance.
    np.testing.assert_allclose(np.asarray(out), np.asarray(ref), rtol=2e-2, atol=2e-2)

    print("KERNEL_OK")
</pallas_src>

<mosaic_0001>
module attributes {stable_mosaic.version = 11 : i64} {
  func.func @encoder_layer_kernel(%arg0: i32, %arg1: i32, %arg2: memref<1x8x32xf32, #tpu.memory_space<vmem>>, %arg3: memref<1x8x32xf32, #tpu.memory_space<vmem>>, %arg4: memref<32x32xbf16, #tpu.memory_space<vmem>>, %arg5: memref<32x32xbf16, #tpu.memory_space<vmem>>, %arg6: memref<32x32xbf16, #tpu.memory_space<vmem>>, %arg7: memref<1x32xf32, #tpu.memory_space<vmem>>, %arg8: memref<1x32xf32, #tpu.memory_space<vmem>>, %arg9: memref<1x32xf32, #tpu.memory_space<vmem>>, %arg10: memref<32x64xbf16, #tpu.memory_space<vmem>>, %arg11: memref<1x64xf32, #tpu.memory_space<vmem>>, %arg12: memref<64x32xbf16, #tpu.memory_space<vmem>>, %arg13: memref<1x32xf32, #tpu.memory_space<vmem>>, %arg14: memref<1x32xf32, #tpu.memory_space<vmem>>, %arg15: memref<1x32xf32, #tpu.memory_space<vmem>>, %arg16: memref<1x32xf32, #tpu.memory_space<vmem>>, %arg17: memref<1x32xf32, #tpu.memory_space<vmem>>, %arg18: memref<1x8x32xf32, #tpu.memory_space<vmem>>) attributes {dimension_semantics = [#tpu.dimension_semantics<parallel>, #tpu.dimension_semantics<parallel>], iteration_bounds = array<i64: 2, 1>, scalar_prefetch = 0 : i64, scratch_operands = 0 : i64, tpu.core_type = #tpu.core_type<tc>, window_params = [{transform_indices = @transform_0, window_bounds = array<i64: 1, 8, 32>}, {transform_indices = @transform_1, window_bounds = array<i64: 1, 8, 32>}, {pipeline_mode = #tpu.pipeline_mode<synchronous>, transform_indices = @transform_2, window_bounds = array<i64: 32, 32>}, {pipeline_mode = #tpu.pipeline_mode<synchronous>, transform_indices = @transform_3, window_bounds = array<i64: 32, 32>}, {pipeline_mode = #tpu.pipeline_mode<synchronous>, transform_indices = @transform_4, window_bounds = array<i64: 32, 32>}, {pipeline_mode = #tpu.pipeline_mode<synchronous>, transform_indices = @transform_5, window_bounds = array<i64: 1, 32>}, {pipeline_mode = #tpu.pipeline_mode<synchronous>, transform_indices = @transform_6, window_bounds = array<i64: 1, 32>}, {pipeline_mode = #tpu.pipeline_mode<synchronous>, transform_indices = @transform_7, window_bounds = array<i64: 1, 32>}, {pipeline_mode = #tpu.pipeline_mode<synchronous>, transform_indices = @transform_8, window_bounds = array<i64: 32, 64>}, {pipeline_mode = #tpu.pipeline_mode<synchronous>, transform_indices = @transform_9, window_bounds = array<i64: 1, 64>}, {pipeline_mode = #tpu.pipeline_mode<synchronous>, transform_indices = @transform_10, window_bounds = array<i64: 64, 32>}, {pipeline_mode = #tpu.pipeline_mode<synchronous>, transform_indices = @transform_11, window_bounds = array<i64: 1, 32>}, {pipeline_mode = #tpu.pipeline_mode<synchronous>, transform_indices = @transform_12, window_bounds = array<i64: 1, 32>}, {pipeline_mode = #tpu.pipeline_mode<synchronous>, transform_indices = @transform_13, window_bounds = array<i64: 1, 32>}, {pipeline_mode = #tpu.pipeline_mode<synchronous>, transform_indices = @transform_14, window_bounds = array<i64: 1, 32>}, {pipeline_mode = #tpu.pipeline_mode<synchronous>, transform_indices = @transform_15, window_bounds = array<i64: 1, 32>}, {transform_indices = @transform_16, window_bounds = array<i64: 1, 8, 32>}]} {
    %c0 = arith.constant 0 : index
    %c0_0 = arith.constant 0 : index
    %c0_1 = arith.constant 0 : index
    %0 = vector.load %arg2[%c0, %c0_0, %c0_1] : memref<1x8x32xf32, #tpu.memory_space<vmem>>, vector<1x8x32xf32>
    %1 = vector.shape_cast %0 : vector<1x8x32xf32> to vector<8x32xf32>
    %c0_2 = arith.constant 0 : index
    %c0_3 = arith.constant 0 : index
    %c0_4 = arith.constant 0 : index
    %2 = vector.load %arg3[%c0_2, %c0_3, %c0_4] : memref<1x8x32xf32, #tpu.memory_space<vmem>>, vector<1x8x32xf32>
    %3 = vector.shape_cast %2 : vector<1x8x32xf32> to vector<8x32xf32>
    %4 = arith.truncf %1 : vector<8x32xf32> to vector<8x32xbf16>
    %c0_5 = arith.constant 0 : index
    %c0_6 = arith.constant 0 : index
    %5 = vector.load %arg4[%c0_5, %c0_6] : memref<32x32xbf16, #tpu.memory_space<vmem>>, vector<32x32xbf16>
    %cst = arith.constant dense<0.000000e+00> : vector<8x32xf32>
    %6 = tpu.matmul %4, %5, %cst {dimension_numbers = #tpu.dot_dimension_numbers<[1], [0], [0], [1], [0, 0, 1, 1], [], []>} : vector<8x32xbf16>, vector<32x32xbf16>, vector<8x32xf32> -> vector<8x32xf32>
    %c0_7 = arith.constant 0 : index
    %c0_8 = arith.constant 0 : index
    %7 = vector.load %arg7[%c0_7, %c0_8] : memref<1x32xf32, #tpu.memory_space<vmem>>, vector<1x32xf32>
    %8 = vector.broadcast %7 : vector<1x32xf32> to vector<8x32xf32>
    %9 = arith.addf %6, %8 : vector<8x32xf32>
    %10 = arith.truncf %3 : vector<8x32xf32> to vector<8x32xbf16>
    %c0_9 = arith.constant 0 : index
    %c0_10 = arith.constant 0 : index
    %11 = vector.load %arg5[%c0_9, %c0_10] : memref<32x32xbf16, #tpu.memory_space<vmem>>, vector<32x32xbf16>
    %cst_11 = arith.constant dense<0.000000e+00> : vector<8x32xf32>
    %12 = tpu.matmul %10, %11, %cst_11 {dimension_numbers = #tpu.dot_dimension_numbers<[1], [0], [0], [1], [0, 0, 1, 1], [], []>} : vector<8x32xbf16>, vector<32x32xbf16>, vector<8x32xf32> -> vector<8x32xf32>
    %c0_12 = arith.constant 0 : index
    %c0_13 = arith.constant 0 : index
    %13 = vector.load %arg8[%c0_12, %c0_13] : memref<1x32xf32, #tpu.memory_space<vmem>>, vector<1x32xf32>
    %14 = vector.broadcast %13 : vector<1x32xf32> to vector<8x32xf32>
    %15 = arith.addf %12, %14 : vector<8x32xf32>
    %16 = arith.truncf %3 : vector<8x32xf32> to vector<8x32xbf16>
    %c0_14 = arith.constant 0 : index
    %c0_15 = arith.constant 0 : index
    %17 = vector.load %arg6[%c0_14, %c0_15] : memref<32x32xbf16, #tpu.memory_space<vmem>>, vector<32x32xbf16>
    %cst_16 = arith.constant dense<0.000000e+00> : vector<8x32xf32>
    %18 = tpu.matmul %16, %17, %cst_16 {dimension_numbers = #tpu.dot_dimension_numbers<[1], [0], [0], [1], [0, 0, 1, 1], [], []>} : vector<8x32xbf16>, vector<32x32xbf16>, vector<8x32xf32> -> vector<8x32xf32>
    %c0_17 = arith.constant 0 : index
    %c0_18 = arith.constant 0 : index
    %19 = vector.load %arg9[%c0_17, %c0_18] : memref<1x32xf32, #tpu.memory_space<vmem>>, vector<1x32xf32>
    %20 = vector.broadcast %19 : vector<1x32xf32> to vector<8x32xf32>
    %21 = arith.addf %18, %20 : vector<8x32xf32>
    %cst_19 = arith.constant 0.353553385 : f32
    %22 = vector.broadcast %cst_19 : f32 to vector<8x32xf32>
    %23 = arith.mulf %9, %22 : vector<8x32xf32>
    %24 = vector.extract_strided_slice %23 {offsets = [0, 0], sizes = [8, 8], strides = [1, 1]} : vector<8x32xf32> to vector<8x8xf32>
    %25 = vector.extract_strided_slice %23 {offsets = [0, 8], sizes = [8, 8], strides = [1, 1]} : vector<8x32xf32> to vector<8x8xf32>
    %26 = vector.extract_strided_slice %23 {offsets = [0, 16], sizes = [8, 8], strides = [1, 1]} : vector<8x32xf32> to vector<8x8xf32>
    %27 = vector.extract_strided_slice %23 {offsets = [0, 24], sizes = [8, 8], strides = [1, 1]} : vector<8x32xf32> to vector<8x8xf32>
    %28 = vector.shape_cast %24 : vector<8x8xf32> to vector<1x8x8xf32>
    %29 = vector.shape_cast %25 : vector<8x8xf32> to vector<1x8x8xf32>
    %30 = vector.shape_cast %26 : vector<8x8xf32> to vector<1x8x8xf32>
    %31 = vector.shape_cast %27 : vector<8x8xf32> to vector<1x8x8xf32>
    %32 = tpu.concatenate %28, %29, %30, %31 in 0 : vector<1x8x8xf32>, vector<1x8x8xf32>, vector<1x8x8xf32>, vector<1x8x8xf32> -> vector<4x8x8xf32>
    %33 = arith.truncf %32 : vector<4x8x8xf32> to vector<4x8x8xbf16>
    %34 = vector.extract_strided_slice %15 {offsets = [0, 0], sizes = [8, 8], strides = [1, 1]} : vector<8x32xf32> to vector<8x8xf32>
    %35 = vector.extract_strided_slice %15 {offsets = [0, 8], sizes = [8, 8], strides = [1, 1]} : vector<8x32xf32> to vector<8x8xf32>
    %36 = vector.extract_strided_slice %15 {offsets = [0, 16], sizes = [8, 8], strides = [1, 1]} : vector<8x32xf32> to vector<8x8xf32>
    %37 = vector.extract_strided_slice %15 {offsets = [0, 24], sizes = [8, 8], strides = [1, 1]} : vector<8x32xf32> to vector<8x8xf32>
    %38 = vector.shape_cast %34 : vector<8x8xf32> to vector<1x8x8xf32>
    %39 = vector.shape_cast %35 : vector<8x8xf32> to vector<1x8x8xf32>
    %40 = vector.shape_cast %36 : vector<8x8xf32> to vector<1x8x8xf32>
    %41 = vector.shape_cast %37 : vector<8x8xf32> to vector<1x8x8xf32>
    %42 = tpu.concatenate %38, %39, %40, %41 in 0 : vector<1x8x8xf32>, vector<1x8x8xf32>, vector<1x8x8xf32>, vector<1x8x8xf32> -> vector<4x8x8xf32>
    %43 = arith.truncf %42 : vector<4x8x8xf32> to vector<4x8x8xbf16>
    %44 = vector.extract_strided_slice %21 {offsets = [0, 0], sizes = [8, 8], strides = [1, 1]} : vector<8x32xf32> to vector<8x8xf32>
    %45 = vector.extract_strided_slice %21 {offsets = [0, 8], sizes = [8, 8], strides = [1, 1]} : vector<8x32xf32> to vector<8x8xf32>
    %46 = vector.extract_strided_slice %21 {offsets = [0, 16], sizes = [8, 8], strides = [1, 1]} : vector<8x32xf32> to vector<8x8xf32>
    %47 = vector.extract_strided_slice %21 {offsets = [0, 24], sizes = [8, 8], strides = [1, 1]} : vector<8x32xf32> to vector<8x8xf32>
    %48 = vector.shape_cast %44 : vector<8x8xf32> to vector<1x8x8xf32>
    %49 = vector.shape_cast %45 : vector<8x8xf32> to vector<1x8x8xf32>
    %50 = vector.shape_cast %46 : vector<8x8xf32> to vector<1x8x8xf32>
    %51 = vector.shape_cast %47 : vector<8x8xf32> to vector<1x8x8xf32>
    %52 = tpu.concatenate %48, %49, %50, %51 in 0 : vector<1x8x8xf32>, vector<1x8x8xf32>, vector<1x8x8xf32>, vector<1x8x8xf32> -> vector<4x8x8xf32>
    %53 = arith.truncf %52 : vector<4x8x8xf32> to vector<4x8x8xbf16>
    "tpu.trace_start"() <{level = 10 : i32, message = "hqd,hkd->hqk"}> : () -> ()
    %cst_20 = arith.constant dense<0.000000e+00> : vector<4x8x8xf32>
    %54 = tpu.matmul %33, %43, %cst_20 {dimension_numbers = #tpu.dot_dimension_numbers<[2], [2], [1], [1], [0, 0, 0, 1, 1, 1], [0], [0]>} : vector<4x8x8xbf16>, vector<4x8x8xbf16>, vector<4x8x8xf32> -> vector<4x8x8xf32>
    "tpu.trace_stop"() : () -> ()
    %cst_21 = arith.constant dense<0xFF800000> : vector<4x8xf32>
    %55 = vector.multi_reduction <maximumf>, %54, %cst_21 [2] : vector<4x8x8xf32> to vector<4x8xf32>
    %56 = vector.shape_cast %55 : vector<4x8xf32> to vector<4x8x1xf32>
    %57 = vector.broadcast %56 : vector<4x8x1xf32> to vector<4x8x8xf32>
    %58 = arith.subf %54, %57 : vector<4x8x8xf32>
    %59 = math.exp %58 : vector<4x8x8xf32>
    %cst_22 = arith.constant dense<0.000000e+00> : vector<4x8xf32>
    %60 = vector.multi_reduction <add>, %59, %cst_22 [2] : vector<4x8x8xf32> to vector<4x8xf32>
    %61 = vector.shape_cast %60 : vector<4x8xf32> to vector<4x8x1xf32>
    %62 = arith.truncf %59 : vector<4x8x8xf32> to vector<4x8x8xbf16>
    "tpu.trace_start"() <{level = 10 : i32, message = "hqk,hkd->hqd"}> : () -> ()
    %cst_23 = arith.constant dense<0.000000e+00> : vector<4x8x8xf32>
    %63 = tpu.matmul %62, %53, %cst_23 {dimension_numbers = #tpu.dot_dimension_numbers<[2], [1], [1], [2], [0, 0, 0, 1, 1, 2], [0], [0]>} : vector<4x8x8xbf16>, vector<4x8x8xbf16>, vector<4x8x8xf32> -> vector<4x8x8xf32>
    "tpu.trace_stop"() : () -> ()
    %64 = tpu.reciprocal %61 {approx = true} : vector<4x8x1xf32> -> vector<4x8x1xf32>
    %65 = vector.broadcast %64 : vector<4x8x1xf32> to vector<4x8x8xf32>
    %66 = arith.mulf %63, %65 : vector<4x8x8xf32>
    %67 = vector.extract_strided_slice %66 {offsets = [0, 0, 0], sizes = [1, 8, 8], strides = [1, 1, 1]} : vector<4x8x8xf32> to vector<1x8x8xf32>
    %68 = vector.shape_cast %67 : vector<1x8x8xf32> to vector<8x8xf32>
    %69 = vector.extract_strided_slice %66 {offsets = [1, 0, 0], sizes = [1, 8, 8], strides = [1, 1, 1]} : vector<4x8x8xf32> to vector<1x8x8xf32>
    %70 = vector.shape_cast %69 : vector<1x8x8xf32> to vector<8x8xf32>
    %71 = vector.extract_strided_slice %66 {offsets = [2, 0, 0], sizes = [1, 8, 8], strides = [1, 1, 1]} : vector<4x8x8xf32> to vector<1x8x8xf32>
    %72 = vector.shape_cast %71 : vector<1x8x8xf32> to vector<8x8xf32>
    %73 = vector.extract_strided_slice %66 {offsets = [3, 0, 0], sizes = [1, 8, 8], strides = [1, 1, 1]} : vector<4x8x8xf32> to vector<1x8x8xf32>
    %74 = vector.shape_cast %73 : vector<1x8x8xf32> to vector<8x8xf32>
    %75 = tpu.concatenate %68, %70, %72, %74 in 1 : vector<8x8xf32>, vector<8x8xf32>, vector<8x8xf32>, vector<8x8xf32> -> vector<8x32xf32>
    %76 = arith.addf %1, %75 : vector<8x32xf32>
    %cst_24 = arith.constant dense<0.000000e+00> : vector<8xf32>
    %77 = vector.multi_reduction <add>, %76, %cst_24 [1] : vector<8x32xf32> to vector<8xf32>
    %78 = vector.shape_cast %77 : vector<8xf32> to vector<8x1xf32>
    %cst_25 = arith.constant 3.200000e+01 : f32
    %79 = vector.broadcast %cst_25 : f32 to vector<8x1xf32>
    %80 = arith.divf %78, %79 : vector<8x1xf32>
    %81 = vector.broadcast %80 : vector<8x1xf32> to vector<8x32xf32>
    %82 = arith.subf %76, %81 : vector<8x32xf32>
    %83 = arith.mulf %82, %82 : vector<8x32xf32>
    %cst_26 = arith.constant dense<0.000000e+00> : vector<8xf32>
    %84 = vector.multi_reduction <add>, %83, %cst_26 [1] : vector<8x32xf32> to vector<8xf32>
    %85 = vector.shape_cast %84 : vector<8xf32> to vector<8x1xf32>
    %cst_27 = arith.constant 3.200000e+01 : f32
    %86 = vector.broadcast %cst_27 : f32 to vector<8x1xf32>
    %87 = arith.divf %85, %86 : vector<8x1xf32>
    %cst_28 = arith.constant 9.99999974E-6 : f32
    %88 = vector.broadcast %cst_28 : f32 to vector<8x1xf32>
    %89 = arith.addf %87, %88 : vector<8x1xf32>
    %90 = math.rsqrt %89 : vector<8x1xf32>
    %91 = vector.broadcast %90 : vector<8x1xf32> to vector<8x32xf32>
    %92 = arith.mulf %82, %91 : vector<8x32xf32>
    %c0_29 = arith.constant 0 : index
    %c0_30 = arith.constant 0 : index
    %93 = vector.load %arg14[%c0_29, %c0_30] : memref<1x32xf32, #tpu.memory_space<vmem>>, vector<1x32xf32>
    %94 = vector.broadcast %93 : vector<1x32xf32> to vector<8x32xf32>
    %95 = arith.mulf %92, %94 : vector<8x32xf32>
    %c0_31 = arith.constant 0 : index
    %c0_32 = arith.constant 0 : index
    %96 = vector.load %arg15[%c0_31, %c0_32] : memref<1x32xf32, #tpu.memory_space<vmem>>, vector<1x32xf32>
    %97 = vector.broadcast %96 : vector<1x32xf32> to vector<8x32xf32>
    %98 = arith.addf %95, %97 : vector<8x32xf32>
    %99 = arith.truncf %98 : vector<8x32xf32> to vector<8x32xbf16>
    %c0_33 = arith.constant 0 : index
    %c0_34 = arith.constant 0 : index
    %100 = vector.load %arg10[%c0_33, %c0_34] : memref<32x64xbf16, #tpu.memory_space<vmem>>, vector<32x64xbf16>
    %cst_35 = arith.constant dense<0.000000e+00> : vector<8x64xf32>
    %101 = tpu.matmul %99, %100, %cst_35 {dimension_numbers = #tpu.dot_dimension_numbers<[1], [0], [0], [1], [0, 0, 1, 1], [], []>} : vector<8x32xbf16>, vector<32x64xbf16>, vector<8x64xf32> -> vector<8x64xf32>
    %c0_36 = arith.constant 0 : index
    %c0_37 = arith.constant 0 : index
    %102 = vector.load %arg11[%c0_36, %c0_37] : memref<1x64xf32, #tpu.memory_space<vmem>>, vector<1x64xf32>
    %103 = vector.broadcast %102 : vector<1x64xf32> to vector<8x64xf32>
    %104 = arith.addf %101, %103 : vector<8x64xf32>
    %cst_38 = arith.constant 0.000000e+00 : f32
    %105 = vector.broadcast %cst_38 : f32 to vector<8x64xf32>
    %106 = arith.maximumf %104, %105 : vector<8x64xf32>
    %107 = arith.truncf %106 : vector<8x64xf32> to vector<8x64xbf16>
    %c0_39 = arith.constant 0 : index
    %c0_40 = arith.constant 0 : index
    %108 = vector.load %arg12[%c0_39, %c0_40] : memref<64x32xbf16, #tpu.memory_space<vmem>>, vector<64x32xbf16>
    %cst_41 = arith.constant dense<0.000000e+00> : vector<8x32xf32>
    %109 = tpu.matmul %107, %108, %cst_41 {dimension_numbers = #tpu.dot_dimension_numbers<[1], [0], [0], [1], [0, 0, 1, 1], [], []>} : vector<8x64xbf16>, vector<64x32xbf16>, vector<8x32xf32> -> vector<8x32xf32>
    %c0_42 = arith.constant 0 : index
    %c0_43 = arith.constant 0 : index
    %110 = vector.load %arg13[%c0_42, %c0_43] : memref<1x32xf32, #tpu.memory_space<vmem>>, vector<1x32xf32>
    %111 = vector.broadcast %110 : vector<1x32xf32> to vector<8x32xf32>
    %112 = arith.addf %109, %111 : vector<8x32xf32>
    %113 = arith.addf %98, %112 : vector<8x32xf32>
    %cst_44 = arith.constant dense<0.000000e+00> : vector<8xf32>
    %114 = vector.multi_reduction <add>, %113, %cst_44 [1] : vector<8x32xf32> to vector<8xf32>
    %115 = vector.shape_cast %114 : vector<8xf32> to vector<8x1xf32>
    %cst_45 = arith.constant 3.200000e+01 : f32
    %116 = vector.broadcast %cst_45 : f32 to vector<8x1xf32>
    %117 = arith.divf %115, %116 : vector<8x1xf32>
    %118 = vector.broadcast %117 : vector<8x1xf32> to vector<8x32xf32>
    %119 = arith.subf %113, %118 : vector<8x32xf32>
    %120 = arith.mulf %119, %119 : vector<8x32xf32>
    %cst_46 = arith.constant dense<0.000000e+00> : vector<8xf32>
    %121 = vector.multi_reduction <add>, %120, %cst_46 [1] : vector<8x32xf32> to vector<8xf32>
    %122 = vector.shape_cast %121 : vector<8xf32> to vector<8x1xf32>
    %cst_47 = arith.constant 3.200000e+01 : f32
    %123 = vector.broadcast %cst_47 : f32 to vector<8x1xf32>
    %124 = arith.divf %122, %123 : vector<8x1xf32>
    %cst_48 = arith.constant 9.99999974E-6 : f32
    %125 = vector.broadcast %cst_48 : f32 to vector<8x1xf32>
    %126 = arith.addf %124, %125 : vector<8x1xf32>
    %127 = math.rsqrt %126 : vector<8x1xf32>
    %128 = vector.broadcast %127 : vector<8x1xf32> to vector<8x32xf32>
    %129 = arith.mulf %119, %128 : vector<8x32xf32>
    %c0_49 = arith.constant 0 : index
    %c0_50 = arith.constant 0 : index
    %130 = vector.load %arg16[%c0_49, %c0_50] : memref<1x32xf32, #tpu.memory_space<vmem>>, vector<1x32xf32>
    %131 = vector.broadcast %130 : vector<1x32xf32> to vector<8x32xf32>
    %132 = arith.mulf %129, %131 : vector<8x32xf32>
    %c0_51 = arith.constant 0 : index
    %c0_52 = arith.constant 0 : index
    %133 = vector.load %arg17[%c0_51, %c0_52] : memref<1x32xf32, #tpu.memory_space<vmem>>, vector<1x32xf32>
    %134 = vector.broadcast %133 : vector<1x32xf32> to vector<8x32xf32>
    %135 = arith.addf %132, %134 : vector<8x32xf32>
    %c0_53 = arith.constant 0 : index
    %c0_54 = arith.constant 0 : index
    %c0_55 = arith.constant 0 : index
    %136 = vector.load %arg18[%c0_53, %c0_54, %c0_55] : memref<1x8x32xf32, #tpu.memory_space<vmem>>, vector<1x8x32xf32>
    %137 = vector.shape_cast %136 : vector<1x8x32xf32> to vector<8x32xf32>
    %138 = vector.shape_cast %135 : vector<8x32xf32> to vector<1x8x32xf32>
    tpu.vector_store %arg18[%c0_53, %c0_54, %c0_55], %138 {strides = array<i32>} : memref<1x8x32xf32, #tpu.memory_space<vmem>>, vector<1x8x32xf32>,
    return
  }
  func.func @transform_0(%arg0: i32, %arg1: i32) -> (i32, i32, i32) {
    %c0_i32 = arith.constant 0 : i32
    %c0_i32_0 = arith.constant 0 : i32
    return %arg0, %arg1, %c0_i32 : i32, i32, i32
  }
  func.func @transform_1(%arg0: i32, %arg1: i32) -> (i32, i32, i32) {
    %c0_i32 = arith.constant 0 : i32
    %c0_i32_0 = arith.constant 0 : i32
    %c0_i32_1 = arith.constant 0 : i32
    return %arg0, %c0_i32, %c0_i32_0 : i32, i32, i32
  }
  func.func @transform_2(%arg0: i32, %arg1: i32) -> (i32, i32) {
    %c0_i32 = arith.constant 0 : i32
    %c0_i32_0 = arith.constant 0 : i32
    %c0_i32_1 = arith.constant 0 : i32
    return %c0_i32, %c0_i32_0 : i32, i32
  }
  func.func @transform_3(%arg0: i32, %arg1: i32) -> (i32, i32) {
    %c0_i32 = arith.constant 0 : i32
    %c0_i32_0 = arith.constant 0 : i32
    %c0_i32_1 = arith.constant 0 : i32
    return %c0_i32, %c0_i32_0 : i32, i32
  }
  func.func @transform_4(%arg0: i32, %arg1: i32) -> (i32, i32) {
    %c0_i32 = arith.constant 0 : i32
    %c0_i32_0 = arith.constant 0 : i32
    %c0_i32_1 = arith.constant 0 : i32
    return %c0_i32, %c0_i32_0 : i32, i32
  }
  func.func @transform_5(%arg0: i32, %arg1: i32) -> (i32, i32) {
    %c0_i32 = arith.constant 0 : i32
    %c0_i32_0 = arith.constant 0 : i32
    %c0_i32_1 = arith.constant 0 : i32
    return %c0_i32, %c0_i32_0 : i32, i32
  }
  func.func @transform_6(%arg0: i32, %arg1: i32) -> (i32, i32) {
    %c0_i32 = arith.constant 0 : i32
    %c0_i32_0 = arith.constant 0 : i32
    %c0_i32_1 = arith.constant 0 : i32
    return %c0_i32, %c0_i32_0 : i32, i32
  }
  func.func @transform_7(%arg0: i32, %arg1: i32) -> (i32, i32) {
    %c0_i32 = arith.constant 0 : i32
    %c0_i32_0 = arith.constant 0 : i32
    %c0_i32_1 = arith.constant 0 : i32
    return %c0_i32, %c0_i32_0 : i32, i32
  }
  func.func @transform_8(%arg0: i32, %arg1: i32) -> (i32, i32) {
    %c0_i32 = arith.constant 0 : i32
    %c0_i32_0 = arith.constant 0 : i32
    %c0_i32_1 = arith.constant 0 : i32
    return %c0_i32, %c0_i32_0 : i32, i32
  }
  func.func @transform_9(%arg0: i32, %arg1: i32) -> (i32, i32) {
    %c0_i32 = arith.constant 0 : i32
    %c0_i32_0 = arith.constant 0 : i32
    %c0_i32_1 = arith.constant 0 : i32
    return %c0_i32, %c0_i32_0 : i32, i32
  }
  func.func @transform_10(%arg0: i32, %arg1: i32) -> (i32, i32) {
    %c0_i32 = arith.constant 0 : i32
    %c0_i32_0 = arith.constant 0 : i32
    %c0_i32_1 = arith.constant 0 : i32
    return %c0_i32, %c0_i32_0 : i32, i32
  }
  func.func @transform_11(%arg0: i32, %arg1: i32) -> (i32, i32) {
    %c0_i32 = arith.constant 0 : i32
    %c0_i32_0 = arith.constant 0 : i32
    %c0_i32_1 = arith.constant 0 : i32
    return %c0_i32, %c0_i32_0 : i32, i32
  }
  func.func @transform_12(%arg0: i32, %arg1: i32) -> (i32, i32) {
    %c0_i32 = arith.constant 0 : i32
    %c0_i32_0 = arith.constant 0 : i32
    %c0_i32_1 = arith.constant 0 : i32
    return %c0_i32, %c0_i32_0 : i32, i32
  }
  func.func @transform_13(%arg0: i32, %arg1: i32) -> (i32, i32) {
    %c0_i32 = arith.constant 0 : i32
    %c0_i32_0 = arith.constant 0 : i32
    %c0_i32_1 = arith.constant 0 : i32
    return %c0_i32, %c0_i32_0 : i32, i32
  }
  func.func @transform_14(%arg0: i32, %arg1: i32) -> (i32, i32) {
    %c0_i32 = arith.constant 0 : i32
    %c0_i32_0 = arith.constant 0 : i32
    %c0_i32_1 = arith.constant 0 : i32
    return %c0_i32, %c0_i32_0 : i32, i32
  }
  func.func @transform_15(%arg0: i32, %arg1: i32) -> (i32, i32) {
    %c0_i32 = arith.constant 0 : i32
    %c0_i32_0 = arith.constant 0 : i32
    %c0_i32_1 = arith.constant 0 : i32
    return %c0_i32, %c0_i32_0 : i32, i32
  }
  func.func @transform_16(%arg0: i32, %arg1: i32) -> (i32, i32, i32) {
    %c0_i32 = arith.constant 0 : i32
    %c0_i32_0 = arith.constant 0 : i32
    return %arg0, %arg1, %c0_i32 : i32, i32, i32
  }
}

</mosaic_0001>

<bundles_post_ra>
// kernel: tpu_custom_call.1
= control target key start
LH: loop header
LB: loop body
LE: loop exit
PB: predicated region body
PF: predicated region fallthrough
CT: control target
= control target key end

     0   :  { %s2638_s0 = inlined_call_operand.vmem [shape: f32[2,8,32], index: 0, kind: input, shape index: {}]   ;;  %s2639_s1 = inlined_call_operand.vmem [shape: f32[2,8,32], index: 1, kind: input, shape index: {}]   ;;  %s2640_s2 = inlined_call_operand.vmem [shape: bf16[32,32], index: 2, kind: input, shape index: {}]   ;;  %s2641_s3 = inlined_call_operand.hbm [shape: bf16[32,32], index: 3, kind: input, shape index: {}]   ;;  %s2642_s4 = inlined_call_operand.hbm [shape: bf16[32,32], index: 4, kind: input, shape index: {}]   ;;  %s2643_s5 = inlined_call_operand.vmem [shape: f32[1,32], index: 5, kind: input, shape index: {}]   ;;  %s2644_s6 = inlined_call_operand.vmem [shape: f32[1,32], index: 6, kind: input, shape index: {}]   ;;  %s2645_s7 = inlined_call_operand.hbm [shape: f32[1,32], index: 7, kind: input, shape index: {}]   ;;  %s2646_s8 = inlined_call_operand.hbm [shape: bf16[32,64], index: 8, kind: input, shape index: {}]   ;;  %s2647_s9 = inlined_call_operand.hbm [shape: f32[1,64], index: 9, kind: input, shape index: {}]   ;;  %s2648_s10 = inlined_call_operand.vmem [shape: bf16[64,32], index: 10, kind: input, shape index: {}]   ;;  %s2649_s11 = inlined_call_operand.vmem [shape: f32[1,32], index: 11, kind: input, shape index: {}]   ;;  %s2650_s12 = inlined_call_operand.vmem [shape: f32[1,32], index: 12, kind: input, shape index: {}]   ;;  %s2651_s13 = inlined_call_operand.vmem [shape: f32[1,32], index: 13, kind: input, shape index: {}]   ;;  %s2652_s14 = inlined_call_operand.vmem [shape: f32[1,32], index: 14, kind: input, shape index: {}]   ;;  %s2653_s15 = inlined_call_operand.vmem [shape: f32[1,32], index: 15, kind: input, shape index: {}]   ;;  %s2654_s16 = inlined_call_operand.hbm [shape: f32[2,8,32], index: 16, kind: output, shape index: {}]  }
   0x1   :  { %2663 = sst [smem:[#allocation23_spill]] %s2638_s0 }
   0x2   :  { %2664 = sst [smem:[#allocation24_spill]] %s2642_s4 }
   0x3   :  { %2665 = sst [smem:[#allocation25_spill]] %s2653_s15 }
   0x4   :  { %2666 = sst [smem:[#allocation26_spill]] %s2654_s16 }
   0x5   :  { %21 = vsyncpa [#allocation3], 0 }
   0x6   :  { %22 = vsyncpa [#allocation6], 0 }
   0x7   :  { %23 = vsyncpa [#allocation9], 0 }
   0x8   :  { %24 = vsyncpa [#allocation4], 0 }
   0x9   :  { %26 = vsyncpa [#allocation4 + $0x1], 0  ;;  %s2319_s21 = smov 0   ;;  %s2321_s22 = smov 0  }
   0xa   :  { %s2323_s23 = smov 0   ;;  %s2325_s24 = smov 0  }
   0xb   :  { %s2327_s25 = smov 0   ;;  %s2329_s26 = smov 0  }
   0xc LB: > { %2667 = sst [smem:[#allocation16_spill]] %s2196_s21  ;;  %s1669_s27 = sadd.s32 4294967295, %s2216_s26   ;;  %s2216_s26 = sphi %s2329_s26, %s32_s26   ;;  %s2212_s25 = sphi %s2327_s25, %s2691_s25   ;;  %s2208_s24 = sphi %s2325_s24, %s2694_s24   ;;  %s2204_s23 = sphi %s2323_s23, %s2689_s23   ;;  %s2200_s22 = sphi %s2321_s22, %s2693_s22   ;;  %s2196_s21 = sphi %s2319_s21, %s2692_s21  }
   0xd   : > { %2668 = sst [smem:[#allocation17_spill]] %s2204_s23  ;;  %s1670_s28 = sadd.s32 4294967294, %s2216_s26  }
   0xe   : > { %2669 = sst [smem:[#allocation18_spill]] %s2212_s25  ;;  %s44_s29 = sadd.s32 1, %s2212_s25 }
   0xf   : > { %2670 = sst [smem:[#allocation19_spill]] %s2216_s26  ;;  %s401_s30 = sadd.s32 1, %s2204_s23 }
  0x10   : > { %p46_p0 = scmp.ge.s32.totalorder %s44_s29, 2  ;;  %p411_p1 = scmp.ne.s32.totalorder %s2204_s23, %s2200_s22 }
  0x11   : > { %p412_p2 = scmp.eq.s32.totalorder %s1669_s27, 1  ;;  %p417_p3 = scmp.ne.s32.totalorder %s2200_s22, %s2196_s21 }
  0x12   : > { %s2696_s29 = smov (%p46_p0, %s44_s29), 0  ;;  %p418_p5 = scmp.eq.s32.totalorder %s1670_s28, 1 }
  0x13   : > { %2671 = sst [smem:[#allocation20_spill]] %s2696_s29  ;;  %p2359_p4 = por %p412_p2, %p411_p1 }
  0x14   : > { %s396_s17 = ssub.s32 %s2212_s25, %s2696_s29  ;;  %p1671_p6 = scmp.ge.s32.totalorder %s2216_s26, 1 }
  0x15   : > { %p399_p7 = scmp.eq.s32.totalorder %s396_s17, 0  ;;  %p2366_p8 = por %p418_p5, %p417_p3 }
  0x16   : > { %p425_p9 = scmp.lt.s32.totalorder %s2216_s26, 3  ;;  %p2378_p11 = scmp.eq.s32.totalorder %s1669_s27, 0 }
  0x17   : > { %s2673_s18 = scalar_select %p2366_p8, 1, 0 }
  0x18   : > { %s2372_s19 = scalar_select %p399_p7, %s2204_s23, %s401_s30  }
  0x19   : > { %2674 = sst [smem:[#allocation21_spill]] %s2673_s18  ;;  %p2374_p10 = pnand %p1671_p6, %p425_p9 }
  0x1a   : > { %2675 = sst [smem:[#allocation22_spill]] %s2372_s19  ;;  %s2218_s28 = smov [#allocation5]  }
  0x1b   : > { %p1872_p12 = pneg %p2374_p10  ;;  %s453_s17 = sshll.u32 %s2218_s28, 4  ;;  %s454_s17 = int_to_ptr.vmem [resolvable:$true] %s453_s17 }
  0x1c   : > { %s2219_s30 = smov [#allocation8]   ;;  %s2009_s19 = scalar_lea.vmem %s454_s17, 256 }
  0x1d   : > { %p2386_p13 = pnand %p2378_p11, %p1872_p12  ;;  %s483_s25 = sshll.u32 %s2219_s30, 4  ;;  %s484_s25 = int_to_ptr.vmem [resolvable:$true] %s483_s25 }
  0x1e   : > { %p2010_p1 = scmp.ne.s32.totalorder %s454_s17, %s2009_s19  ;;  %p2017_p5 = scmp.lt.s32.totalorder %s454_s17, %s454_s17 }
  0x1f   : > { %p2392_p0 = pneg %p2386_p13  ;;  %p2018_p6 = scmp.lt.s32.totalorder %s2009_s19, %s2009_s19 }
  0x21   : > { %p2012_p2 = pnand %p2010_p1, %p2392_p0  ;;  %p2019_p7 = por %p2018_p6, %p2017_p5 }
  0x23   : > { %p2013_p3 = pneg %p2012_p2 }
  0x25   : > { %p2020_p9 = pnand %p2019_p7, %p2013_p3 }
  0x27   : > { %2023 = shalt.err (!%p2020_p9)
}
  0x28   : > { %s2220_s28 = smov 64   ;;  %s2221_s30 = smov 4  }
  0x29   : > { %s2680_s4 = sld [smem:[#allocation24_spill]]  ;;  %s2035_s26 = scalar_lea.vmem %s484_s25, 256 }
  0x2a   : > { %p2036_p12 = scmp.ne.s32.totalorder %s484_s25, %s2035_s26  ;;  %p2043_p5 = scmp.lt.s32.totalorder %s484_s25, %s484_s25 }
  0x2b   : > { %p2044_p3 = scmp.lt.s32.totalorder %s2035_s26, %s2035_s26 }
  0x2c   : > { %p2038_p1 = pnand %p2036_p12, %p2392_p0 }
  0x2d   : > { %p2045_p6 = por %p2044_p3, %p2043_p5 }
  0x2e   : > { %p2039_p2 = pneg %p2038_p1 }
  0x2f   : > { %1878 = dma.hbm_to_vmem [thread:$0]  (!%p2386_p13), %s2680_s4, 256, %s454_s17, [#allocation6], %s2220_s28, %s2220_s28, %s2221_s30  }
  0x30   : > { %p2046_p7 = pnand %p2045_p6, %p2039_p2 }
  0x32   : > { %2049 = shalt.err (!%p2046_p7)
}
  0x33   : > { %1884 = dma.hbm_to_vmem [thread:$0]  (!%p2386_p13), %s2646_s8, 256, %s484_s25, [#allocation9], %s2220_s28, %s2220_s28, %s2221_s30  }
  0x34   : > { %s2222_s23 = smov [#allocation2]   ;;  %s2223_s17 = smov [#allocation7]  }
  0x35   : > { %s440_s18 = sshll.u32 %s2222_s23, 4  ;;  %s473_s4 = sshll.u32 %s2223_s17, 4  ;;  %s441_s18 = int_to_ptr.vmem [resolvable:$true] %s440_s18  ;;  %s474_s4 = int_to_ptr.vmem [resolvable:$true] %s473_s4 }
  0x36   : > { %s2061_s15 = scalar_lea.vmem %s441_s18, 256  ;;  %p2069_p2 = scmp.lt.s32.totalorder %s441_s18, %s441_s18 }
  0x37   : > { %p2062_p9 = scmp.ne.s32.totalorder %s441_s18, %s2061_s15  ;;  %p2070_p5 = scmp.lt.s32.totalorder %s2061_s15, %s2061_s15 }
  0x39   : > { %p2064_p12 = pnand %p2062_p9, %p2392_p0  ;;  %p2071_p3 = por %p2070_p5, %p2069_p2 }
  0x3b   : > { %p2065_p1 = pneg %p2064_p12 }
  0x3d   : > { %p2072_p6 = pnand %p2071_p3, %p2065_p1 }
  0x3f   : > { %2075 = shalt.err (!%p2072_p6)
}
  0x40   : > { %1875 = dma.hbm_to_vmem [thread:$0]  (!%p2386_p13), %s2641_s3, 256, %s441_s18, [#allocation3], %s2220_s28, %s2220_s28, %s2221_s30  }
  0x41   : > { %s2087_s26 = scalar_lea.vmem %s474_s4, 16  ;;  %s2094_s15 = scalar_lea.vmem %s474_s4, 32 }
  0x42   : > { %p2088_p7 = scmp.ne.s32.totalorder %s474_s4, %s2087_s26  ;;  %p2095_p2 = scmp.lt.s32.totalorder %s474_s4, %s474_s4 }
  0x43   : > { %p2096_p1 = scmp.lt.s32.totalorder %s2094_s15, %s2087_s26 }
  0x44   : > { %p2090_p9 = pnand %p2088_p7, %p2392_p0 }
  0x45   : > { %p2097_p5 = por %p2096_p1, %p2095_p2 }
  0x46   : > { %p2091_p12 = pneg %p2090_p9 }
  0x48   : > { %p2098_p3 = pnand %p2097_p5, %p2091_p12 }
  0x4a   : > { %2101 = shalt.err (!%p2098_p3)
}
  0x4b   : > { %1881 = dma.hbm_to_vmem [thread:$0]  (!%p2386_p13), %s2645_s7, 16, %s474_s4, [#allocation6]  }
  0x4c   : > { %s2224_s28 = smov [#allocation10]  }
  0x4d   : > { %s497_s30 = sshll.u32 %s2224_s28, 4  ;;  %s498_s30 = int_to_ptr.vmem [resolvable:$true] %s497_s30 }
  0x4e   : > { %s2113_s18 = scalar_lea.vmem %s498_s30, 16  ;;  %s2120_s17 = scalar_lea.vmem %s498_s30, 32 }
  0x4f   : > { %p2114_p6 = scmp.ne.s32.totalorder %s498_s30, %s2113_s18  ;;  %p2121_p8 = scmp.lt.s32.totalorder %s498_s30, %s498_s30 }
  0x50   : > { %p2122_p2 = scmp.lt.s32.totalorder %s2120_s17, %s2113_s18 }
  0x51   : > { %p2116_p7 = pnand %p2114_p6, %p2392_p0 }
  0x52   : > { %p2123_p12 = por %p2122_p2, %p2121_p8 }
  0x53   : > { %p2117_p9 = pneg %p2116_p7 }
  0x55   : > { %p2124_p1 = pnand %p2123_p12, %p2117_p9 }
  0x57   : > { %2127 = shalt.err (!%p2124_p1)
}
  0x58   : > { %1887 = dma.hbm_to_vmem [thread:$0]  (!%p2386_p13), %s2647_s9, 16, %s498_s30, [#allocation9]  }
  0x59   : > { %545 = sbr.rel (%p2374_p10) target bundleno = 2137 (0x859), region = 84 }
  0x5e   : > { %2179 = dma.done.wait (%p2378_p11), [#allocation3], 256  }
  0x5f   : > { %2181 = vsyncadd (%p2378_p11), [#allocation3], 4294967040 }
  0x60   : > { %2183 = dma.done.wait (%p2378_p11), [#allocation6], 272  }
  0x61   : > { %2185 = vsyncadd (%p2378_p11), [#allocation6], 4294967024 }
  0x62   : > { %2187 = dma.done.wait (%p2378_p11), [#allocation9], 272  }
  0x63   : > { %2189 = vsyncadd (%p2378_p11), [#allocation9], 4294967024  ;;  %p617_p8 = scmp.lt.s32.totalorder %s2208_s24, 1  ;;  %v2225_v0 = vmov 0.0   ;;  %vm2226_vm0 = vmmov 0   ;;  %s2681_s27 = sld [smem:[#allocation23_spill]] }
  0x64   : > { %1758 = vmatprep.subr.bf16.mxu1 %v2225_v0  ;;  %1762 = vmatprep.mubr.msk.bf16.mxu1 %vm2226_vm0, %v2225_v0  ;;  %v1966_v1 = vld [vmem:[%s2640_s2 + $0x8] sm:$0xff]   ;;  %v1967_v2 = vld [vmem:[%s2640_s2] sm:$0xff]   ;;  %vm655_vm1 = vcmask 261120   ;;  %v1970_v9 = vld [vmem:[#allocation5 + $0x8] sm:$0xff]   ;;  %vm872_vm2 = vcmask 64512   ;;  %s2228_s21 = smov 104  }
  0x65   : > { %s618_s4 = scalar_select %p617_p8, %s2208_s24, 1  ;;  %1774 = vmatprep.subr.bf16.mxu0 %v2225_v0  ;;  %1778 = vmatprep.mubr.msk.bf16.mxu0 %vm2226_vm0, %v2225_v0  ;;  %v1968_v4 = vld [vmem:[#allocation2 + $0x8] sm:$0xff]   ;;  %v1969_v6 = vld [vmem:[#allocation2] sm:$0xff]   ;;  %v1971_v10 = vld [vmem:[#allocation5] sm:$0xff]   ;;  %vm1100_vm3 = vcmask 1043456   ;;  %vm1303_vm4 = vcmask 130048  }
  0x66   : > { %1759 = vmatpush3.bf16.msra.mxu1 %v1966_v1  ;;  %1775 = vmatpush3.bf16.msra.mxu0 %v1970_v9  ;;  %v1687_v11 = vld [vmem:[%s2643_s5] ss:$0 sm:$0xff]  ;;  %s2231_s15 = smov 16   ;;  %s2232_s19 = smov 24   ;;  %vm1305_vm5 = vcmask 195584   ;;  %vm1446_vm6 = vcmask 523264  }
  0x67   : > { %s1685_s29 = sshll.u32 %s618_s4, 3  ;;  %1760 = vmatprep.subr.bf16.mxu1 %v2225_v0  ;;  %1776 = vmatprep.subr.bf16.mxu0 %v2225_v0  ;;  %s2227_s4 = smov 120   ;;  %v1691_v18 = vld [vmem:[%s2644_s6] ss:$0 sm:$0xff] }
  0x68   : > { %s627_s17 = scalar_lea.vmem %s2639_s1, %s1685_s29  ;;  %v1695_v27 = vld [vmem:[#allocation7] ss:$0 sm:$0xff]  ;;  %s2682_s16 = sld [smem:[#allocation25_spill]] }
  0x69   : > { %s623_s26 = scalar_lea.vmem %s2681_s27, %s1685_s29  ;;  %v630_v7 = vld [vmem:[%s627_s17] sm:$0xff]  ;;  %s2229_s27 = smov 112  }
  0x6a   : > { %v2471_v3 = vld [vmem:[%s623_s26] sm:$0xff]  ;;  %1761 = vmatpush3.bf16.msra.mxu1 %v1967_v2  ;;  %v699_v8 = vpack.c.bf16 %v630_v7, %v630_v7  ;;  %1777 = vmatpush3.bf16.msra.mxu0 %v1971_v10  ;;  %s2230_s26 = smov 8   ;;  %s1722_s25 = sshll.u32 %s2208_s24, 7 }
  0x6b   : > { %v631_v5 = vpack.c.bf16 %v2471_v3, %v2471_v3  ;;  %1766 = vmatprep.subr.bf16.mxu1 %v2225_v0  ;;  %1788 = vmatprep.subr.bf16.mxu0 %v2225_v0  ;;  %s2233_s30 = smov [#allocation11]  }
  0x6c   : > { %s2132_s18 = sshll.u32 %s2233_s30, 4  ;;  %s2133_s18 = int_to_ptr.vmem [resolvable:$false] %s2132_s18 }
  0x6d   : > { %1763 = vmatmul.mubr.msk.bf16.vlgmr.msra.gmra.mxu1 %vm655_vm1, %v631_v5  ;;  %1779 = vmatmul.mubr.msk.bf16.vlgmr.msra.gmra.mxu0 %vm655_vm1, %v699_v8  ;;  %s2134_s24 = scalar_lea.vmem %s2133_s18, 256 }
  0x6e   : > { %1767 = vmatpush3.bf16.msra.mxu1 %v1968_v4  ;;  %1770 = vmatprep.mubr.msk.bf16.mxu1 %vm2226_vm0, %v2225_v0 }
  0x6f   : > { %1768 = vmatprep.subr.bf16.mxu1 %v2225_v0  ;;  %1790 = vmatprep.mubr.msk.bf16.mxu0 %vm2226_vm0, %v2225_v0 }
  0x72   : > { %1769 = vmatpush3.bf16.msra.mxu1 %v1969_v6 }
  0x73   : > { %1782 = vmatprep.subr.bf16.mxu1 %v2225_v0 }
  0x75   : > { %1771 = vmatmul.mubr.msk.bf16.vlgmr.msra.gmra.mxu1 %vm655_vm1, %v699_v8 }
  0x76   : > { %1784 = vmatprep.mubr.msk.bf16.mxu1 %vm2226_vm0, %v2225_v0 }
 0x12d   : > { %v693_v12 = vpop.f32.mrf.mxu1  ;;  %v823_v28 = vpop.f32.mrf.mxu0 }
 0x12e   : > { %v694_v13 = vadd.f32 %v1687_v11, %v693_v12  ;;  %v2508_v29 = vadd.f32 %v1695_v27, %v823_v28 }
 0x12f   : > { %v1764_v14 = vpop.f32.mrf.mxu1  ;;  %v1780_v30 = vpop.f32.mrf.mxu0 }
 0x130   : > { %v829_v15 = vmul.f32 0.35355338, %v694_v13  ;;  %v868_v43 = vpack.c.bf16 %v2508_v29, %v2508_v29 }
 0x131   : > { %v696_v16 = vpop.f32.mrf.mxu1  ;;  %v826_v31 = vpop.f32.mrf.mxu0 }
 0x132   : > { %831 = vrot.lane.b32.xlu1 %v829_v15, %s2227_s4  ;;  %v840_v26 = vpack.c.bf16 %v829_v15, %v829_v15  ;;  %v1102_v47 = vsel %vm1100_vm3, %v868_v43, 0 }
 0x133   : > { %v1765_v17 = vpop.f32.mrf.mxu1  ;;  %v1781_v32 = vpop.f32.mrf.mxu0 }
 0x135   : > { %v760_v19 = vpop.f32.mrf.mxu1 }
 0x136   : > { %v761_v20 = vadd.f32 %v1691_v18, %v760_v19 }
 0x137   : > { %v1772_v21 = vpop.f32.mrf.mxu1 }
 0x138   : > { %851 = vrot.lane.b32.xlu1 %v761_v20, %s2228_s21  ;;  %845 = vrot.lane.b32.xlu0 %v761_v20, %s2227_s4  ;;  %v854_v22 = vpack.c.bf16 %v761_v20, %v761_v20 }
 0x139   : > { %v763_v23 = vpop.f32.mrf.mxu1 }
 0x13a   : > { %v877_v24 = vsel %vm872_vm2, %v854_v22, 0 }
 0x13b   : > { %v1773_v25 = vpop.f32.mrf.mxu1  ;;  %1783 = vmatpush3.bf16.xpose.msra.mxu1 %v877_v24 }
 0x13c   : > { %837 = vrot.lane.b32.xlu1 %v829_v15, %s2228_s21  ;;  %848 = vrot.lane.b32.xlu0 %v761_v20, %s2229_s27 }
 0x13d   : > { %1794 = vmatprep.subr.bf16.mxu1 %v2225_v0 }
 0x140   : > { %834 = vrot.lane.b32.xlu0 %v829_v15, %s2229_s27  ;;  %859 = vrot.lane.b32.xlu1 %v2508_v29, %s2227_s4 }
 0x142   : > { %1785 = vmatmul.mubr.msk.bf16.vlgmr.msra.gmra.mxu1 %vm872_vm2, %v840_v26 }
 0x143   : > { %1796 = vmatprep.mubr.msk.bf16.mxu1 %vm2226_vm0, %v2225_v0 }
 0x1a4   : > { %v832_v33 = vpop.permute.xlu1 %831 }
 0x1a5   : > { %v841_v42 = vpack.c.bf16 %v832_v33, %v832_v33 }
 0x1aa   : > { %v846_v34 = vpop.permute.xlu0 %845  ;;  %v852_v37 = vpop.permute.xlu1 %851 }
 0x1ab   : > { %v855_v35 = vpack.c.bf16 %v846_v34, %v846_v34  ;;  %v857_v40 = vpack.c.bf16 %v852_v37, %v852_v37 }
 0x1ad   : > { %v923_v36 = vsel %vm872_vm2, %v855_v35, 0  ;;  %v1015_v45 = vsel %vm872_vm2, %v857_v40, 0 }
 0x1ae   : > { %1789 = vmatpush3.bf16.xpose.msra.mxu0 %v923_v36  ;;  %v849_v38 = vpop.permute.xlu0 %848  ;;  %v838_v48 = vpop.permute.xlu1 %837 }
 0x1af   : > { %v856_v39 = vpack.c.bf16 %v849_v38, %v849_v38  ;;  %1800 = vmatprep.subr.bf16.mxu0 %v2225_v0  ;;  %v843_v49 = vpack.c.bf16 %v838_v48, %v838_v48 }
 0x1b1   : > { %v969_v41 = vsel %vm872_vm2, %v856_v39, 0 }
 0x1b2   : > { %1795 = vmatpush3.bf16.xpose.msra.mxu1 %v969_v41  ;;  %v835_v44 = vpop.permute.xlu0 %834  ;;  %v860_v55 = vpop.permute.xlu1 %859 }
 0x1b3   : > { %1806 = vmatprep.subr.bf16.mxu1 %v2225_v0  ;;  %v842_v46 = vpack.c.bf16 %v835_v44, %v835_v44  ;;  %v869_v56 = vpack.c.bf16 %v860_v55, %v860_v55 }
 0x1b5   : > { %1791 = vmatmul.mubr.msk.bf16.vlgmr.msra.gmra.mxu0 %vm872_vm2, %v841_v42  ;;  %v1148_v57 = vsel %vm1100_vm3, %v869_v56, 0 }
 0x1b6   : > { %1801 = vmatpush3.bf16.xpose.msra.mxu0 %v1015_v45  ;;  %1802 = vmatprep.mubr.msk.bf16.mxu0 %vm2226_vm0, %v2225_v0 }
 0x1b7   : > { %1812 = vmatprep.subr.bf16.mxu0 %v2225_v0 }
 0x1b9   : > { %1797 = vmatmul.mubr.msk.bf16.vlgmr.msra.gmra.mxu1 %vm872_vm2, %v842_v46 }
 0x1ba   : > { %1807 = vmatpush3.bf16.msra.mxu1 %v1102_v47  ;;  %1808 = vmatprep.mubr.msk.bf16.mxu1 %vm2226_vm0, %v2225_v0 }
 0x1bb   : > { %1818 = vmatprep.subr.bf16.mxu1 %v2225_v0 }
 0x1bd   : > { %1803 = vmatmul.mubr.msk.bf16.vlgmr.msra.gmra.mxu0 %vm872_vm2, %v843_v49 }
 0x1be   : > { %1814 = vmatprep.mubr.msk.bf16.mxu0 %vm2226_vm0, %v2225_v0  ;;  %1813 = vmatpush3.bf16.msra.mxu0 %v1148_v57 }
 0x1bf   : > { %1824 = vmatprep.subr.bf16.mxu0 %v2225_v0 }
 0x202   : > { %v913_v50 = vpop.f32.mrf.mxu1 }
 0x203   : > { %v1057_v51 = vsel %vm872_vm2, %v913_v50, -inf }
 0x204   : > { %1058 = vmax.xlane.f32.xlu0 %v1057_v51  ;;  %v1786_v52 = vpop.f32.mrf.mxu1 }
 0x206   : > { %v916_v53 = vpop.f32.mrf.mxu1 }
 0x208   : > { %v1787_v54 = vpop.f32.mrf.mxu1 }
 0x275   : > { %v959_v58 = vpop.f32.mrf.mxu0 }
 0x276   : > { %v1060_v59 = vsel %vm872_vm2, %v959_v58, -inf }
 0x277   : > { %1061 = vmax.xlane.f32.xlu1 %v1060_v59  ;;  %v1792_v60 = vpop.f32.mrf.mxu0 }
 0x279   : > { %v962_v61 = vpop.f32.mrf.mxu0  ;;  %v1005_v62 = vpop.f32.mrf.mxu1 }
 0x27a   : > { %v1063_v63 = vsel %vm872_vm2, %v1005_v62, -inf }
 0x27b   : > { %v1793_v1 = vpop.f32.mrf.mxu0  ;;  %1064 = vmax.xlane.f32.xlu0 %v1063_v63  ;;  %v1798_v2 = vpop.f32.mrf.mxu1 }
 0x27d   : > { %v1008_v4 = vpop.f32.mrf.mxu1  ;;  %v1051_v5 = vpop.f32.mrf.mxu0 }
 0x27e   : > { %v1066_v6 = vsel %vm872_vm2, %v1051_v5, -inf }
 0x27f   : > { %v1804_v7 = vpop.f32.mrf.mxu0  ;;  %1067 = vmax.xlane.f32.xlu0 %v1066_v6  ;;  %v1799_v8 = vpop.f32.mrf.mxu1 }
 0x281   : > { %v1054_v9 = vpop.f32.mrf.mxu0 }
 0x283   : > { %v1805_v10 = vpop.f32.mrf.mxu0 }
 0x288   : > { %865 = vrot.lane.b32.xlu1 %v2508_v29, %s2228_s21 }
 0x28d   : > { %v1059_v11 = vpop.xlane.xlu0 %1058 }
 0x28e   : > { %v1069_v12 = vsub.f32 %v913_v50, %v1059_v11 }
 0x290   : > { %v1073_v13 = vmul.f32 1.442695, %v1069_v12 }
 0x292   : > { %1978 = vpow2.f32 %v1073_v13 }
 0x295   : > { %862 = vrot.lane.b32.xlu0 %v2508_v29, %s2229_s27  ;;  %s2683_s27 = sld [smem:[#allocation26_spill]] }
 0x29f   : > { %v1979_v14 = vpop.eup %1978 }
 0x2a0   : > { %v1093_v15 = vpack.c.bf16 %v1979_v14, %v1979_v14  ;;  %v1081_v35 = vsel %vm872_vm2, %v1979_v14, 0.0 }
 0x2a2   : > { %1809 = vmatmul.mubr.msk.bf16.vlgmr.msra.gmra.mxu1 %vm872_vm2, %v1093_v15 }
 0x2a3   : > { %1820 = vmatprep.mubr.msk.bf16.mxu1 %vm2226_vm0, %v2225_v0 }
 0x300   : > { %v1062_v16 = vpop.xlane.xlu1 %1061 }
 0x301   : > { %v1070_v17 = vsub.f32 %v959_v58, %v1062_v16 }
 0x303   : > { %v1075_v18 = vmul.f32 1.442695, %v1070_v17 }
 0x304   : > { %v1065_v19 = vpop.xlane.xlu0 %1064  ;;  %v866_v27 = vpop.permute.xlu1 %865 }
 0x305   : > { %1980 = vpow2.f32 %v1075_v18  ;;  %v1071_v20 = vsub.f32 %v1005_v62, %v1065_v19  ;;  %v871_v29 = vpack.c.bf16 %v866_v27, %v866_v27  ;;  %v1707_v27 = vld [vmem:[%s2650_s12] ss:$0 sm:$0xff] }
 0x307   : > { %v1077_v21 = vmul.f32 1.442695, %v1071_v20  ;;  %v1240_v33 = vsel %vm1100_vm3, %v871_v29, 0  ;;  %v1972_v20 = vld [vmem:[#allocation8 + $0x8] sm:$0xff]   ;;  %v1708_v29 = vld [vmem:[%s2651_s13] ss:$0 sm:$0xff] }
 0x308   : > { %v1068_v22 = vpop.xlane.xlu0 %1067 }
 0x309   : > { %1982 = vpow2.f32 %v1077_v21  ;;  %v1072_v23 = vsub.f32 %v1051_v5, %v1068_v22  ;;  %v1973_v21 = vld [vmem:[#allocation8] sm:$0xff]   ;;  %v1975_v22 = vld [vmem:[%s2648_s10 + $0x10] sm:$0xff]  }
 0x30b   : > { %v1079_v24 = vmul.f32 1.442695, %v1072_v23 }
 0x30c   : > { %v863_v25 = vpop.permute.xlu0 %862 }
 0x30d   : > { %1984 = vpow2.f32 %v1079_v24  ;;  %v870_v26 = vpack.c.bf16 %v863_v25, %v863_v25 }
 0x30f   : > { %v1194_v28 = vsel %vm1100_vm3, %v870_v26, 0 }
 0x310   : > { %1819 = vmatpush3.bf16.msra.mxu1 %v1194_v28 }
 0x311   : > { %1830 = vmatprep.subr.bf16.mxu1 %v2225_v0 }
 0x312   : > { %v1981_v30 = vpop.eup %1980 }
 0x313   : > { %v1084_v31 = vsel %vm872_vm2, %v1981_v30, 0.0  ;;  %v1094_v32 = vpack.c.bf16 %v1981_v30, %v1981_v30 }
 0x314   : > { %1085 = vadd.xlane.f32.xlu1 %v1084_v31 }
 0x315   : > { %1815 = vmatmul.mubr.msk.bf16.vlgmr.msra.gmra.mxu0 %vm872_vm2, %v1094_v32 }
 0x316   : > { %v1983_v34 = vpop.eup %1982  ;;  %1825 = vmatpush3.bf16.msra.mxu0 %v1240_v33  ;;  %1826 = vmatprep.mubr.msk.bf16.mxu0 %vm2226_vm0, %v2225_v0  ;;  %v1976_v33 = vld [vmem:[%s2648_s10 + $0x8] sm:$0xff]  }
 0x317   : > { %v1087_v36 = vsel %vm872_vm2, %v1983_v34, 0.0  ;;  %v1095_v37 = vpack.c.bf16 %v1983_v34, %v1983_v34  ;;  %1838 = vmatprep.subr.bf16.mxu0 %v2225_v0  ;;  %v1977_v34 = vld [vmem:[%s2648_s10] sm:$0xff]  }
 0x318   : > { %1082 = vadd.xlane.f32.xlu1 %v1081_v35  ;;  %1088 = vadd.xlane.f32.xlu0 %v1087_v36  ;;  %v1709_v35 = vld [vmem:[#allocation10] ss:$0 sm:$0xff] }
 0x319   : > { %1821 = vmatmul.mubr.msk.bf16.vlgmr.msra.gmra.mxu1 %vm872_vm2, %v1095_v37 }
 0x31a   : > { %v1985_v38 = vpop.eup %1984  ;;  %1834 = vmatprep.mubr.msk.bf16.mxu1 %vm2226_vm0, %v2225_v0  ;;  %1831 = vmatpush3.bf16.msra.mxu1 %v1972_v20 }
 0x31b   : > { %v1090_v39 = vsel %vm872_vm2, %v1985_v38, 0.0  ;;  %v1096_v40 = vpack.c.bf16 %v1985_v38, %v1985_v38  ;;  %1832 = vmatprep.subr.bf16.mxu1 %v2225_v0 }
 0x31c   : > { %1091 = vadd.xlane.f32.xlu0 %v1090_v39 }
 0x31d   : > { %1827 = vmatmul.mubr.msk.bf16.vlgmr.msra.gmra.mxu0 %vm872_vm2, %v1096_v40 }
 0x31e   : > { %1846 = vmatprep.mubr.msk.bf16.mxu0 %vm2226_vm0, %v2225_v0  ;;  %1833 = vmatpush3.bf16.msra.mxu1 %v1973_v21 }
 0x362   : > { %v1138_v41 = vpop.f32.mrf.mxu1 }
 0x364   : > { %v1810_v42 = vpop.f32.mrf.mxu1 }
 0x366   : > { %v1141_v43 = vpop.f32.mrf.mxu1 }
 0x367   : > { %v1713_v43 = vld [vmem:[%s2649_s11] ss:$0 sm:$0xff] }
 0x368   : > { %v1811_v44 = vpop.f32.mrf.mxu1 }
 0x39d   : > { %v1086_v45 = vpop.xlane.xlu1 %1085 }
 0x39e   : > { %1986 = vrcp.f32 %v1086_v45 }
 0x3a1   : > { %v1089_v46 = vpop.xlane.xlu0 %1088  ;;  %v1083_v4 = vpop.xlane.xlu1 %1082 }
 0x3a2   : > { %1988 = vrcp.f32 %v1089_v46 }
 0x3a5   : > { %v1092_v47 = vpop.xlane.xlu0 %1091 }
 0x3a6   : > { %1990 = vrcp.f32 %v1092_v47 }
 0x3a7   : > { %1992 = vrcp.f32 %v1083_v4 }
 0x3ab   : > { %v1987_v48 = vpop.eup %1986 }
 0x3af   : > { %v1989_v52 = vpop.eup %1988 }
 0x3b3   : > { %v1991_v58 = vpop.eup %1990 }
 0x3b4   : > { %v1993_v5 = vpop.eup %1992 }
 0x3b5   : > { %v1286_v8 = vmul.f32 %v1993_v5, %v1138_v41 }
 0x3d5   : > { %v1184_v49 = vpop.f32.mrf.mxu0 }
 0x3d6   : > { %v1287_v50 = vmul.f32 %v1987_v48, %v1184_v49 }
 0x3d7   : > { %v1816_v51 = vpop.f32.mrf.mxu0 }
 0x3d8   : > { %1291 = vrot.lane.b32.xlu0 %v1287_v50, %s2230_s26  ;;  %s1534_s26 = scalar_lea.hbm %s2683_s27, %s1722_s25 }
 0x3d9   : > { %v1187_v53 = vpop.f32.mrf.mxu0  ;;  %v1230_v54 = vpop.f32.mrf.mxu1 }
 0x3da   : > { %v1288_v55 = vmul.f32 %v1989_v52, %v1230_v54 }
 0x3db   : > { %v1817_v56 = vpop.f32.mrf.mxu0  ;;  %v1822_v57 = vpop.f32.mrf.mxu1 }
 0x3dc   : > { %1295 = vrot.lane.b32.xlu1 %v1288_v55, %s2231_s15 }
 0x3dd   : > { %v1233_v59 = vpop.f32.mrf.mxu1  ;;  %v1276_v60 = vpop.f32.mrf.mxu0 }
 0x3de   : > { %v1289_v61 = vmul.f32 %v1991_v58, %v1276_v60  ;;  %v1719_v59 = vld [vmem:[%s2652_s14] ss:$0 sm:$0xff] }
 0x3df   : > { %v1823_v62 = vpop.f32.mrf.mxu1  ;;  %v1828_v63 = vpop.f32.mrf.mxu0 }
 0x3e0   : > { %1299 = vrot.lane.b32.xlu1 %v1289_v61, %s2232_s19  ;;  %s614_s19 = sand.u32 1, %s2200_s22   ;;  %v1720_v61 = vld [vmem:[%s2682_s16] ss:$0 sm:$0xff] }
 0x3e1   : > { %v1279_v1 = vpop.f32.mrf.mxu0  ;;  %s1684_s23 = sshll.u32 %s614_s19, 3  ;;  %s1522_s15 = scalar_lea.sflag [#allocation4], %s614_s19 }
 0x3e2   : > { %s616_s4 = scalar_lea.vmem [#allocation11], %s1684_s23 }
 0x3e3   : > { %v1829_v2 = vpop.f32.mrf.mxu0  ;;  %s1536_s29 = sshll.u32 %s616_s4, 4  ;;  %s1537_s29 = int_to_ptr.vmem [resolvable:$true] %s1536_s29 }
 0x3e4   : > { %s2128_s28 = scalar_lea.vmem %s1537_s29, 128  ;;  %p2135_p0 = scmp.lt.s32.totalorder %s1537_s29, %s2133_s18 }
 0x3e5   : > { %p2129_p10 = scmp.ne.s32.totalorder %s1537_s29, %s2128_s28  ;;  %p2136_p5 = scmp.lt.s32.totalorder %s2134_s24, %s2128_s28 }
 0x3e7   : > { %p2130_p11 = pnand %p2129_p10, %p2359_p4  ;;  %p2137_p3 = por %p2136_p5, %p2135_p0 }
 0x3e9   : > { %p2131_p13 = pneg %p2130_p11 }
 0x3eb   : > { %p2138_p6 = pnand %p2137_p3, %p2131_p13 }
 0x44a   : > { %v1292_v6 = vpop.permute.xlu0 %1291 }
 0x44b   : > { %v1302_v9 = vsel %vm872_vm2, %v1286_v8, %v1292_v6 }
 0x44e   : > { %v1296_v7 = vpop.permute.xlu1 %1295 }
 0x44f   : > { %v1304_v10 = vsel %vm1303_vm4, %v1302_v9, %v1296_v7 }
 0x452   : > { %v1300_v11 = vpop.permute.xlu1 %1299 }
 0x453   : > { %v1306_v12 = vsel %vm1305_vm5, %v1304_v10, %v1300_v11 }
 0x454   : > { %v1307_v13 = vadd.f32 %v1306_v12, %v2471_v3  ;;  %v1974_v3 = vld [vmem:[%s2648_s10 + $0x18] sm:$0xff]  }
 0x455   : > { %1839 = vmatpush3.bf16.msra.mxu0 %v1974_v3 }
 0x456   : > { %v1308_v14 = vsel %vm655_vm1, %v1307_v13, 0.0  ;;  %1840 = vmatprep.subr.bf16.mxu0 %v2225_v0 }
 0x457   : > { %1309 = vadd.xlane.f32.xlu0 %v1308_v14 }
 0x459   : > { %1841 = vmatpush3.bf16.msra.mxu0 %v1975_v22 }
 0x45a   : > { %1842 = vmatprep.subr.bf16.mxu0 %v2225_v0 }
 0x45d   : > { %1843 = vmatpush3.bf16.msra.mxu0 %v1976_v33 }
 0x45e   : > { %1844 = vmatprep.subr.bf16.mxu0 %v2225_v0 }
 0x461   : > { %1845 = vmatpush3.bf16.msra.mxu0 %v1977_v34 }
 0x4e0   : > { %v1310_v15 = vpop.xlane.xlu0 %1309 }
 0x4e1   : > { %v1312_v16 = vmul.f32 0.03125, %v1310_v15 }
 0x4e3   : > { %v1313_v17 = vsub.f32 %v1307_v13, %v1312_v16 }
 0x4e5   : > { %v1314_v18 = vmul.f32 %v1313_v17, %v1313_v17 }
 0x4e7   : > { %v1315_v19 = vsel %vm655_vm1, %v1314_v18, 0.0 }
 0x4e8   : > { %1316 = vadd.xlane.f32.xlu1 %v1315_v19 }
 0x571   : > { %v1317_v23 = vpop.xlane.xlu1 %1316 }
 0x572   : > { %v1318_v24 = vmul.f32 0.03125, %v1317_v23 }
 0x574   : > { %v1319_v25 = vadd.f32 1e-05, %v1318_v24 }
 0x576   : > { %1994 = vrsqrt.f32 %v1319_v25 }
 0x583   : > { %v1995_v26 = vpop.eup %1994 }
 0x584   : > { %v1321_v28 = vmul.f32 %v1995_v26, %v1313_v17 }
 0x586   : > { %v1329_v30 = vmul.f32 %v1707_v27, %v1321_v28 }
 0x588   : > { %v1337_v31 = vadd.f32 %v1708_v29, %v1329_v30 }
 0x58a   : > { %v1338_v32 = vpack.c.bf16 %v1337_v31, %v1337_v31 }
 0x58c   : > { %1835 = vmatmul.mubr.msk.bf16.vlgmr.msra.gmra.mxu1 %vm655_vm1, %v1338_v32 }
 0x64c   : > { %v1399_v36 = vpop.f32.mrf.mxu1 }
 0x64d   : > { %v1400_v37 = vadd.f32 %v1709_v35, %v1399_v36 }
 0x64e   : > { %v1836_v38 = vpop.f32.mrf.mxu1 }
 0x64f   : > { %v1405_v39 = vmax.f32 %v1400_v37, 0.0 }
 0x650   : > { %v1402_v40 = vpop.f32.mrf.mxu1 }
 0x651   : > { %v1406_v41 = vpack.c.bf16 %v1405_v39, %v1405_v39 }
 0x652   : > { %v1837_v42 = vpop.f32.mrf.mxu1 }
 0x653   : > { %1847 = vmatmul.mubr.msk.bf16.vlgmr.msra.gmra.mxu0 %vm1446_vm6, %v1406_v41 }
 0x713   : > { %v1484_v0 = vpop.f32.mrf.mxu0 }
 0x714   : > { %v1485_v44 = vadd.f32 %v1713_v43, %v1484_v0 }
 0x715   : > { %v1848_v45 = vpop.f32.mrf.mxu0 }
 0x716   : > { %v1490_v46 = vadd.f32 %v1485_v44, %v1337_v31 }
 0x717   : > { %v1487_v47 = vpop.f32.mrf.mxu0 }
 0x718   : > { %v1491_v48 = vsel %vm655_vm1, %v1490_v46, 0.0 }
 0x719   : > { %1492 = vadd.xlane.f32.xlu0 %v1491_v48  ;;  %v1849_v49 = vpop.f32.mrf.mxu0 }
 0x7a2   : > { %v1493_v50 = vpop.xlane.xlu0 %1492 }
 0x7a3   : > { %v1494_v51 = vmul.f32 0.03125, %v1493_v50 }
 0x7a5   : > { %v1495_v52 = vsub.f32 %v1490_v46, %v1494_v51 }
 0x7a7   : > { %v1496_v53 = vmul.f32 %v1495_v52, %v1495_v52 }
 0x7a9   : > { %v1497_v54 = vsel %vm655_vm1, %v1496_v53, 0.0 }
 0x7aa   : > { %1498 = vadd.xlane.f32.xlu0 %v1497_v54 }
 0x833   : > { %v1499_v55 = vpop.xlane.xlu0 %1498 }
 0x834   : > { %v1500_v56 = vmul.f32 0.03125, %v1499_v55 }
 0x836   : > { %v1501_v57 = vadd.f32 1e-05, %v1500_v56 }
 0x838   : > { %1996 = vrsqrt.f32 %v1501_v57 }
 0x845   : > { %v1997_v58 = vpop.eup %1996 }
 0x846   : > { %v1503_v60 = vmul.f32 %v1997_v58, %v1495_v52 }
 0x848   : > { %v1511_v62 = vmul.f32 %v1719_v59, %v1503_v60 }
 0x84a   : > { %v1519_v63 = vadd.f32 %v1720_v61, %v1511_v62 }
 0x84c   : > { %1520 = vst.msk [vmem:[%s616_s4] sm:$0xff] %vm655_vm1, %v1519_v63 }
 0x84d   : > { %2141 = shalt.err (!%p2138_p6)
}
 0x84e   : > { %s2142_s23 = scalar_lea.hbm %s1534_s26, 128  ;;  %s2146_s16 = scalar_lea.hbm %s2683_s27, 256 }
 0x84f   : > { %p2143_p7 = scmp.ne.s32.totalorder %s1534_s26, %s2142_s23  ;;  %p2147_p12 = scmp.lt.s32.totalorder %s1534_s26, %s2683_s27 }
 0x850   : > { %p2148_p1 = scmp.lt.s32.totalorder %s2146_s16, %s2142_s23 }
 0x851   : > { %p2144_p9 = pnand %p2143_p7, %p2359_p4 }
 0x852   : > { %p2149_p8 = por %p2148_p1, %p2147_p12 }
 0x853   : > { %p2145_p2 = pneg %p2144_p9 }
 0x855   : > { %p2150_p10 = pnand %p2149_p8, %p2145_p2 }
 0x857   : > { %2153 = shalt.err (!%p2150_p10)
}
 0x858   : > { %1870 = dma.vmem_to_hbm [thread:$0]  (%p2359_p4), %s1537_s29, 128, %s1534_s26, %s1522_s15  }
 0x859 PF: > { %s2684_s20 = sld [smem:[#allocation19_spill]] }
 0x85a   : > { %s2685_s21 = sld [smem:[#allocation16_spill]] }
 0x85b   : > { %s2686_s28 = sld [smem:[#allocation21_spill]] }
 0x85f   : > { %p1902_p11 = scmp.ge.s32.totalorder %s2684_s20, 2 }
 0x860   : > { %s1548_s30 = sand.u32 1, %s2685_s21  }
 0x861   : > { %p2687_p13 = scmp.ne.s32.totalorder %s2686_s28, 0  ;;  %s1549_s18 = scalar_lea.sflag [#allocation4], %s1548_s30 }
 0x863   : > { %p1889_p0 = pnand %p1902_p11, %p2687_p13 }
 0x865   : > { %p1890_p5 = pneg %p1889_p0 }
 0x867   : > { %2191 = dma.done.wait (%p1890_p5), %s1549_s18, 128  }
 0x868   : > { %2193 = vsyncadd (%p1890_p5), %s1549_s18, 4294967168  ;;  %s32_s26 = sadd.s32 1, %s2684_s20   ;;  %s2688_s24 = sld [smem:[#allocation17_spill]] }
 0x869   : > { %p29_p3 = scmp.ge.s32.totalorder %s32_s26, 4   ;;  %s2689_s23 = sld [smem:[#allocation22_spill]] }
 0x86a   : > { %s2690_s0 = sld [smem:[#allocation18_spill]]  ;;  %s2692_s21 = smov %s2200_s22 }
 0x86b   : > { %s2691_s25 = sld [smem:[#allocation20_spill]] }
 0x86c   :  { %31 = sbr.rel (!%p29_p3) target bundleno = 12 (0xc), region = 143 }
 0x86e   : > { %s2693_s22 = smov %s2688_s24 }
 0x870   : > { %s2694_s24 = smov %s2690_s0 }
 0x871   :  { %1554 = vsyncpa [#allocation3], 1 }
 0x872   :  { %1556 = vsyncpa [#allocation3 + $0x1], 1 }
 0x873   :  { %1557 = vsyncpa [#allocation6], 1 }
 0x874   :  { %1558 = vsyncpa [#allocation9], 1 }
 0x875   :  { %1559 = vsyncpa [#allocation4], 1 }
 0x876   :  { %1561 = vsyncpa [#allocation4 + $0x1], 1 }

</bundles_post_ra>
